<compile_context>
chip_gen: v7x
topology: tpu7x:2x2x1
jax: 0.10.0
libtpu: 0.0.40
codegen_flags: <defaults>
</compile_context>

<pallas_src>
import jax
import jax.numpy as jnp
from jax.experimental import pallas as pl
from jax.experimental.pallas import tpu as pltpu


# ---------------------------------------------------------------------------
# Hardware / tiling helpers
# ---------------------------------------------------------------------------
def _round_up(x, m):
    return -(-x // m) * m


def _vmem_budgets():
    """(tile_budget_bytes, vmem_limit_bytes) per TPU generation."""
    vmem_cap = 64 * 1024 * 1024
    try:
        info = pltpu.get_tpu_info()
        for attr in ("vmem_capacity_bytes", "vmem_bytes", "vmem_size_bytes"):
            v = getattr(info, attr, None)
            if v:
                vmem_cap = int(v)
                break
    except Exception:
        pass
    if vmem_cap >= 96 * 1024 * 1024:            # v5e / v6e (128 MiB physical)
        return 8 * 1024 * 1024, 64 * 1024 * 1024
    return 4 * 1024 * 1024, 32 * 1024 * 1024    # v7x (64 MiB physical) / unknown


def _pick_tile_n(n, row_bytes, budget_bytes, min_steps=8, align=None):
    """Largest divisor of n that (a) keeps the tile under `budget_bytes`,
    (b) leaves >= min_steps grid steps when possible, and (c) satisfies the
    sublane alignment (multiple of `align`, or the full dim)."""
    cap = max(1, budget_bytes // max(row_bytes, 1))
    cap = min(cap, max(1, n // min_steps), n)
    for d in range(cap, 0, -1):
        if n % d == 0 and (align is None or d % align == 0 or d == n):
            return d
    return n


# ---------------------------------------------------------------------------
# Kernels
# ---------------------------------------------------------------------------
def _bn_stats_kernel(x_ref, sum_ref, sumsq_ref):
    """Pass 1: accumulate per-channel sum / sum-of-squares over batch tiles.

    Grid = (parallel split, arbitrary tiles).  Each split owns its own
    (1, C, 1) partial-sum output block (resident in VMEM across the
    'arbitrary' axis), so both v7x TensorCores work independently."""
    t = pl.program_id(1)

    @pl.when(t == 0)
    def _init():
        sum_ref[...] = jnp.zeros_like(sum_ref)
        sumsq_ref[...] = jnp.zeros_like(sumsq_ref)

    x = x_ref[...].astype(jnp.float32)                 # (tn, C, HW) f32 regs
    # Leading-axis (pure VPU) reduction first, so only (C, HW) elements go
    # through the XLU cross-lane reduce per tile.
    xs = jnp.sum(x, axis=0)                            # (C, HW)
    xq = jnp.sum(x * x, axis=0)                        # (C, HW)
    sum_ref[...] += jnp.sum(xs, axis=-1, keepdims=True)[None, :, :]
    sumsq_ref[...] += jnp.sum(xq, axis=-1, keepdims=True)[None, :, :]


def _bn_apply_kernel_chw(x_ref, scale_ref, bias_ref, o_ref):
    """Pass 2 (HW already lane-dense): y = max(x * scale + bias, 0)."""
    x = x_ref[...].astype(jnp.float32)                 # (tn, C, HW)
    y = x * scale_ref[...][None, :, :] + bias_ref[...][None, :, :]
    o_ref[...] = jnp.maximum(y, 0.0).astype(o_ref.dtype)


def _bn_apply_kernel_flat(x_ref, scale_ref, bias_ref, o_ref):
    """Pass 2 (lane-dense flat view): y = max(x * scale + bias, 0)."""
    x = x_ref[...].astype(jnp.float32)                 # (tn, C*HW)
    y = x * scale_ref[...] + bias_ref[...]
    o_ref[...] = jnp.maximum(y, 0.0).astype(o_ref.dtype)


# ---------------------------------------------------------------------------
# Wrapper
# ---------------------------------------------------------------------------
def batch_norm_relu(x_nchw, gamma, beta, eps=1e-5):
    """Training-mode BatchNorm2d (batch stats, biased variance) + ReLU.

    x_nchw: (N, C, H, W) float array (f32 or bf16).  Returns same dtype/shape.
    """
    n, c, h, w = x_nchw.shape
    hw = h * w
    m = n * hw
    in_dtype = x_nchw.dtype
    itemsize = jnp.dtype(in_dtype).itemsize
    sub_mult = {4: 8, 2: 16, 1: 32}.get(itemsize, 8)

    tile_budget, vmem_limit = _vmem_budgets()

    # ---------------- Pass 1: per-channel sum / sum-of-squares ------------
    # Free view of the contiguous NCHW buffer: (N, C, H*W).  The last two
    # block dims equal the full array dims, so any batch tile is layout-legal.
    x3 = x_nchw.reshape(n, c, hw)
    row_bytes3 = _round_up(c, sub_mult) * _round_up(hw, 128) * itemsize
    tile_n1 = _pick_tile_n(n, row_bytes3, tile_budget)
    n_tiles = n // tile_n1
    n_split = 2 if (n_tiles % 2 == 0 and n_tiles >= 2) else 1
    tiles_per_split = n_tiles // n_split

    psum, psq = pl.pallas_call(
        _bn_stats_kernel,
        out_shape=(jax.ShapeDtypeStruct((n_split, c, 1), jnp.float32),
                   jax.ShapeDtypeStruct((n_split, c, 1), jnp.float32)),
        grid=(n_split, tiles_per_split),
        in_specs=[pl.BlockSpec((tile_n1, c, hw),
                               lambda p, t: (p * tiles_per_split + t, 0, 0))],
        out_specs=(pl.BlockSpec((1, c, 1), lambda p, t: (p, 0, 0)),
                   pl.BlockSpec((1, c, 1), lambda p, t: (p, 0, 0))),
        compiler_params=pltpu.CompilerParams(
            dimension_semantics=("parallel", "arbitrary"),
            vmem_limit_bytes=vmem_limit),
    )(x3)

    # ---------------- Finalize (tiny, plain JAX on C-sized vectors) -------
    inv_m = 1.0 / float(m)
    total = jnp.sum(psum, axis=0)                       # (C, 1)
    totsq = jnp.sum(psq, axis=0)                        # (C, 1)
    mean = total * inv_m
    # Biased variance (matches BatchNorm2d training normalization), clamped
    # at 0 to guard against E[x^2] - E[x]^2 cancellation.
    var = jnp.maximum(totsq * inv_m - mean * mean, 0.0)
    scale = gamma.reshape(c, 1).astype(jnp.float32) * jax.lax.rsqrt(var + eps)
    bias = beta.reshape(c, 1).astype(jnp.float32) - mean * scale

    # ---------------- Pass 2: y = max(x * scale + bias, 0) ----------------
    if hw % 128 == 0:
        # HW already lane-dense: keep the (N, C, HW) view + (C, 1) vectors.
        tile_n2 = tile_n1
        out3 = pl.pallas_call(
            _bn_apply_kernel_chw,
            out_shape=jax.ShapeDtypeStruct((n, c, hw), in_dtype),
            grid=(n // tile_n2,),
            in_specs=[pl.BlockSpec((tile_n2, c, hw), lambda i: (i, 0, 0)),
                      pl.BlockSpec((c, 1), lambda i: (0, 0)),
                      pl.BlockSpec((c, 1), lambda i: (0, 0))],
            out_specs=pl.BlockSpec((tile_n2, c, hw), lambda i: (i, 0, 0)),
            compiler_params=pltpu.CompilerParams(
                dimension_semantics=("parallel",),
                vmem_limit_bytes=vmem_limit),
        )(x3, scale, bias)
        return out3.reshape(n, c, h, w)

    # Small/odd spatial sizes (7x7 / 14x14 / 28x28 stages): flatten to a
    # lane-dense (N, C*H*W) view so the output store is full-width, and
    # pre-broadcast scale/bias to matching (1, C*H*W) rows.
    chw = c * hw
    x2 = x_nchw.reshape(n, chw)
    scale_row = jnp.broadcast_to(scale, (c, hw)).reshape(1, chw)
    bias_row = jnp.broadcast_to(bias, (c, hw)).reshape(1, chw)
    row_bytes2 = _round_up(chw, 128) * itemsize
    tile_n2 = _pick_tile_n(n, row_bytes2, tile_budget, align=sub_mult)
    out2 = pl.pallas_call(
        _bn_apply_kernel_flat,
        out_shape=jax.ShapeDtypeStruct((n, chw), in_dtype),
        grid=(n // tile_n2,),
        in_specs=[pl.BlockSpec((tile_n2, chw), lambda i: (i, 0)),
                  pl.BlockSpec((1, chw), lambda i: (0, 0)),
                  pl.BlockSpec((1, chw), lambda i: (0, 0))],
        out_specs=pl.BlockSpec((tile_n2, chw), lambda i: (i, 0)),
        compiler_params=pltpu.CompilerParams(
            dimension_semantics=("parallel",),
            vmem_limit_bytes=vmem_limit),
    )(x2, scale_row, bias_row)
    return out2.reshape(n, c, h, w)


# ---------------------------------------------------------------------------
# Reference + test
# ---------------------------------------------------------------------------
def _reference(x_nchw, gamma, beta, eps=1e-5):
    x = x_nchw.astype(jnp.float32)
    mean = jnp.mean(x, axis=(0, 2, 3), keepdims=True)
    var = jnp.var(x, axis=(0, 2, 3), keepdims=True)   # biased, BN training
    xhat = (x - mean) / jnp.sqrt(var + eps)
    y = xhat * gamma.reshape(1, -1, 1, 1) + beta.reshape(1, -1, 1, 1)
    return jnp.maximum(y, 0.0).astype(x_nchw.dtype)


if __name__ == "__main__":
    key = jax.random.PRNGKey(0)
    kx, kg, kb = jax.random.split(key, 3)

    N, C, H, W = 2, 4, 16, 16
    x = jax.random.normal(kx, (N, C, H, W), dtype=jnp.float32)
    # Nonzero random affine params so the scale/bias path is exercised.
    gamma = 1.0 + 0.1 * jax.random.normal(kg, (C,), dtype=jnp.float32)
    beta = 0.1 * jax.random.normal(kb, (C,), dtype=jnp.float32)

    out = batch_norm_relu(x, gamma, beta, eps=1e-5)
    out = jax.block_until_ready(out)

    ref = _reference(x, gamma, beta, eps=1e-5)
    assert out.shape == (N, C, H, W)
    assert out.dtype == x.dtype
    assert jnp.allclose(out, ref, atol=1e-5, rtol=1e-5), "mismatch vs reference"

    print("KERNEL_OK")
</pallas_src>

<mosaic_0001>
module attributes {stable_mosaic.version = 11 : i64} {
  func.func @_bn_stats_kernel(%arg0: i32, %arg1: i32, %arg2: memref<1x4x256xf32, #tpu.memory_space<vmem>>, %arg3: memref<1x4x1xf32, #tpu.memory_space<vmem>>, %arg4: memref<1x4x1xf32, #tpu.memory_space<vmem>>) attributes {dimension_semantics = [#tpu.dimension_semantics<parallel>, #tpu.dimension_semantics<arbitrary>], iteration_bounds = array<i64: 2, 1>, scalar_prefetch = 0 : i64, scratch_operands = 0 : i64, tpu.core_type = #tpu.core_type<tc>, window_params = [{transform_indices = @transform_0, window_bounds = array<i64: 1, 4, 256>}, {transform_indices = @transform_1, window_bounds = array<i64: 1, 4, 1>}, {transform_indices = @transform_2, window_bounds = array<i64: 1, 4, 1>}]} {
    %c0_i32 = arith.constant 0 : i32
    %0 = arith.cmpi eq, %arg1, %c0_i32 : i32
    %1 = arith.extui %0 : i1 to i32
    %c0_i32_0 = arith.constant 0 : i32
    %2 = arith.cmpi ne, %1, %c0_i32_0 : i32
    scf.if %2 {
      %cst_18 = arith.constant 0.000000e+00 : f32
      %19 = vector.broadcast %cst_18 : f32 to vector<1x4x1xf32>
      %c0_19 = arith.constant 0 : index
      %c0_20 = arith.constant 0 : index
      %c0_21 = arith.constant 0 : index
      %20 = vector.load %arg3[%c0_19, %c0_20, %c0_21] : memref<1x4x1xf32, #tpu.memory_space<vmem>>, vector<1x4x1xf32>
      tpu.vector_store %arg3[%c0_19, %c0_20, %c0_21], %19 {strides = array<i32>} : memref<1x4x1xf32, #tpu.memory_space<vmem>>, vector<1x4x1xf32>,
      %cst_22 = arith.constant 0.000000e+00 : f32
      %21 = vector.broadcast %cst_22 : f32 to vector<1x4x1xf32>
      %c0_23 = arith.constant 0 : index
      %c0_24 = arith.constant 0 : index
      %c0_25 = arith.constant 0 : index
      %22 = vector.load %arg4[%c0_23, %c0_24, %c0_25] : memref<1x4x1xf32, #tpu.memory_space<vmem>>, vector<1x4x1xf32>
      tpu.vector_store %arg4[%c0_23, %c0_24, %c0_25], %21 {strides = array<i32>} : memref<1x4x1xf32, #tpu.memory_space<vmem>>, vector<1x4x1xf32>,
    } else {
    }
    %c0 = arith.constant 0 : index
    %c0_1 = arith.constant 0 : index
    %c0_2 = arith.constant 0 : index
    %3 = vector.load %arg2[%c0, %c0_1, %c0_2] : memref<1x4x256xf32, #tpu.memory_space<vmem>>, vector<1x4x256xf32>
    %cst = arith.constant dense<0.000000e+00> : vector<4x256xf32>
    %4 = vector.multi_reduction <add>, %3, %cst [0] : vector<1x4x256xf32> to vector<4x256xf32>
    %5 = arith.mulf %3, %3 : vector<1x4x256xf32>
    %cst_3 = arith.constant dense<0.000000e+00> : vector<4x256xf32>
    %6 = vector.multi_reduction <add>, %5, %cst_3 [0] : vector<1x4x256xf32> to vector<4x256xf32>
    %c0_4 = arith.constant 0 : index
    %c0_5 = arith.constant 0 : index
    %c0_6 = arith.constant 0 : index
    %7 = vector.load %arg3[%c0_4, %c0_5, %c0_6] : memref<1x4x1xf32, #tpu.memory_space<vmem>>, vector<1x4x1xf32>
    %cst_7 = arith.constant dense<0.000000e+00> : vector<4xf32>
    %8 = vector.multi_reduction <add>, %4, %cst_7 [1] : vector<4x256xf32> to vector<4xf32>
    %9 = vector.shape_cast %8 : vector<4xf32> to vector<4x1xf32>
    %10 = vector.shape_cast %9 : vector<4x1xf32> to vector<1x4x1xf32>
    %11 = arith.addf %7, %10 : vector<1x4x1xf32>
    %c0_8 = arith.constant 0 : index
    %c0_9 = arith.constant 0 : index
    %c0_10 = arith.constant 0 : index
    %12 = vector.load %arg3[%c0_8, %c0_9, %c0_10] : memref<1x4x1xf32, #tpu.memory_space<vmem>>, vector<1x4x1xf32>
    tpu.vector_store %arg3[%c0_8, %c0_9, %c0_10], %11 {strides = array<i32>} : memref<1x4x1xf32, #tpu.memory_space<vmem>>, vector<1x4x1xf32>,
    %c0_11 = arith.constant 0 : index
    %c0_12 = arith.constant 0 : index
    %c0_13 = arith.constant 0 : index
    %13 = vector.load %arg4[%c0_11, %c0_12, %c0_13] : memref<1x4x1xf32, #tpu.memory_space<vmem>>, vector<1x4x1xf32>
    %cst_14 = arith.constant dense<0.000000e+00> : vector<4xf32>
    %14 = vector.multi_reduction <add>, %6, %cst_14 [1] : vector<4x256xf32> to vector<4xf32>
    %15 = vector.shape_cast %14 : vector<4xf32> to vector<4x1xf32>
    %16 = vector.shape_cast %15 : vector<4x1xf32> to vector<1x4x1xf32>
    %17 = arith.addf %13, %16 : vector<1x4x1xf32>
    %c0_15 = arith.constant 0 : index
    %c0_16 = arith.constant 0 : index
    %c0_17 = arith.constant 0 : index
    %18 = vector.load %arg4[%c0_15, %c0_16, %c0_17] : memref<1x4x1xf32, #tpu.memory_space<vmem>>, vector<1x4x1xf32>
    tpu.vector_store %arg4[%c0_15, %c0_16, %c0_17], %17 {strides = array<i32>} : memref<1x4x1xf32, #tpu.memory_space<vmem>>, vector<1x4x1xf32>,
    return
  }
  func.func @transform_0(%arg0: i32, %arg1: i32) -> (i32, i32, i32) {
    %c1_i32 = arith.constant 1 : i32
    %0 = arith.muli %arg0, %c1_i32 : i32
    %1 = arith.addi %0, %arg1 : i32
    %c0_i32 = arith.constant 0 : i32
    %c0_i32_0 = arith.constant 0 : i32
    %c0_i32_1 = arith.constant 0 : i32
    return %1, %c0_i32, %c0_i32_0 : i32, i32, i32
  }
  func.func @transform_1(%arg0: i32, %arg1: i32) -> (i32, i32, i32) {
    %c0_i32 = arith.constant 0 : i32
    %c0_i32_0 = arith.constant 0 : i32
    %c0_i32_1 = arith.constant 0 : i32
    return %arg0, %c0_i32, %c0_i32_0 : i32, i32, i32
  }
  func.func @transform_2(%arg0: i32, %arg1: i32) -> (i32, i32, i32) {
    %c0_i32 = arith.constant 0 : i32
    %c0_i32_0 = arith.constant 0 : i32
    %c0_i32_1 = arith.constant 0 : i32
    return %arg0, %c0_i32, %c0_i32_0 : i32, i32, i32
  }
}

</mosaic_0001>

<bundles_post_ra>
// kernel: tpu_custom_call.1
= control target key start
LH: loop header
LB: loop body
LE: loop exit
PB: predicated region body
PF: predicated region fallthrough
CT: control target
= control target key end

     0   :  { %8 = vsyncpa [#allocation3], 0  ;;  %s629_s0 = inlined_call_operand.hbm [shape: f32[2,4,256], index: 0, kind: input, shape index: {}]   ;;  %s630_s1 = inlined_call_operand.vmem [shape: f32[2,4,1], index: 1, kind: output, shape index: {0}]   ;;  %s631_s2 = inlined_call_operand.vmem [shape: f32[2,4,1], index: 2, kind: output, shape index: {1}]  }
   0x1   :  { %10 = vsyncpa [#allocation3 + $0x1], 0  ;;  %s497_s9 = smov 0   ;;  %s499_s10 = smov 0  }
   0x2   :  { %s501_s11 = smov 0   ;;  %s503_s12 = smov 0  }
   0x3   :  { %s505_s13 = smov 0   ;;  %s507_s14 = smov 0  }
   0x4 LB: > { %s327_s15 = sadd.s32 4294967295, %s478_s14   ;;  %s28_s16 = sadd.s32 1, %s474_s13  ;;  %s478_s14 = sphi %s507_s14, %s16_s14   ;;  %s474_s13 = sphi %s505_s13, %s641_s13   ;;  %s470_s12 = sphi %s503_s12, %s640_s12   ;;  %s466_s11 = sphi %s501_s11, %s639_s11   ;;  %s462_s10 = sphi %s499_s10, %s638_s10   ;;  %s458_s9 = sphi %s497_s9, %s637_s9  }
   0x5   : > { %p30_p0 = scmp.ge.s32.totalorder %s28_s16, 2  ;;  %s37_s17 = sadd.s32 1, %s466_s11 }
   0x6   : > { %p44_p1 = scmp.ne.s32.totalorder %s466_s11, %s462_s10  ;;  %p45_p2 = scmp.eq.s32.totalorder %s478_s14, 0 }
   0x7   : > { %s643_s16 = smov (%p30_p0, %s28_s16), 0  ;;  %p50_p4 = scmp.ne.s32.totalorder %s462_s10, %s458_s9 }
   0x8   : > { %p533_p3 = por %p45_p2, %p44_p1  ;;  %s34_s19 = ssub.s32 %s474_s13, %s643_s16 }
   0x9   : > { %p51_p5 = scmp.eq.s32.totalorder %s327_s15, 0  ;;  %p35_p6 = scmp.eq.s32.totalorder %s34_s19, 0 }
   0xa   : > { %p347_p8 = scmp.lt.s32.totalorder %s478_s14, 2  ;;  %s126_s22 = sand.u32 1, %s466_s11  }
   0xb   : > { %p540_p7 = por %p51_p5, %p50_p4  ;;  %s340_s23 = sshll.u32 %s474_s13, 7 }
   0xc   : > { %s546_s21 = scalar_select %p35_p6, %s466_s11, %s37_s17  }
   0xd   : > { %s331_s24 = sshll.u32 %s126_s22, 3  ;;  %s553_s27 = scalar_lea.hbm %s629_s0, %s340_s23 }
   0xe   : > { %s130_s28 = scalar_lea.vmem [#allocation2], %s331_s24  ;;  %p557_p9 = pnand %p347_p8, %p533_p3 }
   0xf   : > { %s139_s29 = sshll.u32 %s130_s28, 4  ;;  %s127_s3 = scalar_lea.sflag [#allocation3], %s126_s22  ;;  %s561_s29 = int_to_ptr.vmem [resolvable:$true] %s139_s29 }
  0x10   : > { %s398_s4 = scalar_lea.hbm %s553_s27, 128  ;;  %p400_p13 = pneg %p557_p9 }
  0x11   : > { %p399_p12 = scmp.ne.s32.totalorder %s553_s27, %s398_s4  ;;  %s403_s7 = scalar_lea.hbm %s629_s0, 256 }
  0x12   : > { %p404_p2 = scmp.lt.u32.totalorder %s553_s27, %s629_s0  ;;  %p405_p3 = scmp.lt.u32.totalorder %s403_s7, %s398_s4 }
  0x13   : > { %p401_p0 = pnand %p400_p13, %p399_p12  ;;  %p407_p5 = scmp.lt.u32.totalorder %s398_s4, %s553_s27 }
  0x14   : > { %p406_p4 = por %p405_p3, %p404_p2 }
  0x15   : > { %p402_p1 = pneg %p401_p0 }
  0x16   : > { %p408_p6 = por %p407_p5, %p406_p4 }
  0x18   : > { %p409_p8 = pnand %p408_p6, %p402_p1 }
  0x1a   : > { %412 = shalt.err (!%p409_p8)
}
  0x1b   : > { %s413_s15 = scalar_lea.vmem %s561_s29, 128  ;;  %s480_s17 = smov [#allocation2]  }
  0x1c   : > { %p414_p12 = scmp.ne.s32.totalorder %s561_s29, %s413_s15  ;;  %s418_s18 = sshll.u32 %s480_s17, 4  ;;  %s419_s18 = int_to_ptr.vmem [resolvable:$false] %s418_s18 }
  0x1d   : > { %s420_s19 = scalar_lea.vmem %s419_s18, 256  ;;  %p421_p11 = scmp.lt.s32.totalorder %s561_s29, %s419_s18 }
  0x1e   : > { %p416_p0 = pnand %p414_p12, %p400_p13  ;;  %p422_p2 = scmp.lt.s32.totalorder %s420_s19, %s413_s15 }
  0x20   : > { %p417_p10 = pneg %p416_p0  ;;  %p423_p3 = por %p422_p2, %p421_p11 }
  0x22   : > { %p424_p4 = pnand %p423_p3, %p417_p10 }
  0x24   : > { %427 = shalt.err (!%p424_p4)
}
  0x25   : > { %346 = dma.hbm_to_vmem [thread:$0]  (!%p557_p9), %s553_s27, 128, %s561_s29, %s127_s3  }
  0x26   : > { %p635_p1 = scmp.lt.s32.totalorder %s478_s14, 3  ;;  %p636_p5 = scmp.ge.s32.totalorder %s478_s14, 1 }
  0x28   : > { %p145_p13 = pnand %p636_p5, %p635_p1 }
  0x29   : > { %s150_s22 = sand.u32 (!%p145_p13), 1, %s462_s10  }
  0x2a   : > { %148 = sbr.rel (%p145_p13) target bundleno = 205 (0xcd), region = 24  ;;  %s335_s23 = sshll.u32 (!%p145_p13), %s150_s22, 3 }
  0x2b   : > { %s151_s24 = scalar_lea.sflag (!%p145_p13), [#allocation3], %s150_s22  ;;  %s154_s25 = scalar_lea.vmem (!%p145_p13), [#allocation2], %s335_s23 }
  0x31   : > { %453 = dma.done.wait (%p540_p7), %s151_s24, 128  }
  0x32   : > { %455 = vsyncadd (%p540_p7), %s151_s24, 4294967168  ;;  %p179_p10 = scmp.lt.s32.totalorder %s470_s12, 1  ;;  %vm191_vm0 = vcmask 3072   ;;  %vm202_vm1 = vcmask 1043456   ;;  %v481_v0 = vmov 0.0   ;;  %v194_v1 = vld [vmem:[%s154_s25] sm:$0xff] }
  0x33   : > { %v200_v2 = vcombine.high %v194_v1, %v194_v1  ;;  %v203_v3 = vsel %vm202_vm1, %v194_v1, 0.0  ;;  %v196_v4 = vmul.f32 %v194_v1, %v194_v1 }
  0x34   : > { %s645_s12 = smov (!%p179_p10, %s470_s12), 1 }
  0x35   : > { %s336_s26 = sshll.u32 %s645_s12, 2  ;;  %v204_v5 = vsel %vm202_vm1, %v200_v2, 0.0  ;;  %v213_v6 = vcombine.high %v196_v4, %v196_v4  ;;  %v215_v7 = vsel %vm202_vm1, %v196_v4, 0.0 }
  0x36   : > { %s182_s29 = scalar_lea.vmem %s630_s1, %s336_s26  ;;  %v205_v8 = vadd.f32 %v204_v5, %v203_v3  ;;  %s186_s30 = scalar_lea.vmem %s631_s2, %s336_s26 }
  0x37   : > { %192 = vst.msk [vmem:[%s182_s29] sm:$0xf] %vm191_vm0, %v481_v0  ;;  %v216_v9 = vsel %vm202_vm1, %v213_v6, 0.0  ;;  %193 = vst.msk [vmem:[%s186_s30] sm:$0xf] %vm191_vm0, %v481_v0 }
  0x38   : > { %206 = vadd.xlane.f32.xlu0 %v205_v8  ;;  %v217_v10 = vadd.f32 %v216_v9, %v215_v7 }
  0x3c   : > { %218 = vadd.xlane.f32.xlu0 %v217_v10 }
  0x3e   : > { %v198_v11 = vld [vmem:[%s182_s29] sm:$0xf] }
  0x3f   : > { %v211_v14 = vld [vmem:[%s186_s30] sm:$0xf] }
  0xc5   : > { %v207_v12 = vpop.xlane.xlu0 %206 }
  0xc6   : > { %v208_v13 = vadd.f32 %v207_v12, %v198_v11 }
  0xc8   : > { %210 = vst.msk [vmem:[%s182_s29] sm:$0xf] %vm191_vm0, %v208_v13 }
  0xc9   : > { %v219_v15 = vpop.xlane.xlu0 %218 }
  0xca   : > { %v220_v16 = vadd.f32 %v219_v15, %v211_v14 }
  0xcc   : > { %221 = vst.msk [vmem:[%s186_s30] sm:$0xf] %vm191_vm0, %v220_v16 }
  0xcd PF: > { %s16_s14 = sadd.s32 1, %s478_s14   ;;  %s637_s9 = smov %s462_s10 }
  0xce   : > { %p13_p7 = scmp.ge.s32.totalorder %s16_s14, 4   ;;  %s638_s10 = smov %s466_s11 }
  0xcf   : > { %s639_s11 = smov %s546_s21  ;;  %s640_s12 = smov %s474_s13 }
  0xd0   : > { %s641_s13 = smov %s643_s16  ;;  %15 = sbr.rel (!%p13_p7) target bundleno = 4 (0x4), region = 80 }
  0xd7   :  { %255 = vsyncpa [#allocation3], 1 }
  0xd8   :  { %257 = vsyncpa [#allocation3 + $0x1], 1 }

</bundles_post_ra>
